<compile_context>
chip_gen: v6e
topology: v6e:2x2x1
jax: 0.10.0
libtpu: 0.0.40
codegen_flags: <defaults>
</compile_context>

<pallas_src>
import jax
import jax.numpy as jnp
from jax.experimental import pallas as pl
from jax.experimental.pallas import tpu as pltpu


# ---------------------------------------------------------------------------
# Helpers
# ---------------------------------------------------------------------------
def _round_up(x, m):
    return ((x + m - 1) // m) * m


def _pick_tile(dim, candidates):
    """Largest candidate tile that evenly divides `dim` (dim is pre-padded)."""
    for c in candidates:
        if dim % c == 0:
            return c
    return dim


# ---------------------------------------------------------------------------
# Kernels
# ---------------------------------------------------------------------------
def _aggr_matmul_kernel(mask_ref, feat_ref, out_ref, acc_ref):
    """3-D branch tile: acc += mask_tile.f32 @ feat_tile  (k = last grid axis).

    Block shapes (batch dim squeezed):
      mask_ref: (tm, tk) bf16   feat_ref: (tk, tn) f32
      out_ref : (tm, tn) f32    acc_ref : (tm, tn) f32 VMEM scratch
    """
    @pl.when(pl.program_id(3) == 0)
    def _():
        acc_ref[...] = jnp.zeros_like(acc_ref)

    m = mask_ref[...].astype(jnp.float32)          # 0/1 exact; cheap VPU cast
    acc_ref[...] += jnp.dot(m, feat_ref[...], preferred_element_type=jnp.float32)

    @pl.when(pl.program_id(3) == pl.num_programs(3) - 1)
    def _():
        out_ref[...] = acc_ref[...].astype(out_ref.dtype)


def _aggr_bcast_kernel(mask_ref, feat_ref, out_ref, acc_ref):
    """4-D branch tile: acc += (mask_tile[...,None] * feat_tile).sum(axis=-2).

    Block shapes (batch dim squeezed):
      mask_ref: (tm, tk) bf16   feat_ref: (tm, tk, Dp) f32
      out_ref : (tm, Dp) f32    acc_ref : (tm, Dp) f32 VMEM scratch
    """
    @pl.when(pl.program_id(2) == 0)
    def _():
        acc_ref[...] = jnp.zeros_like(acc_ref)

    m = mask_ref[...].astype(jnp.float32)
    acc_ref[...] += jnp.sum(m[..., None] * feat_ref[...], axis=1)

    @pl.when(pl.program_id(2) == pl.num_programs(2) - 1)
    def _():
        out_ref[...] = acc_ref[...].astype(out_ref.dtype)


# ---------------------------------------------------------------------------
# Wrappers (padding + pallas_call plumbing)
# ---------------------------------------------------------------------------
def _aggr_sum_3d(feat, mask):
    B, N, D = feat.shape
    assert mask.shape == (B, N, N)
    feat = feat.astype(jnp.float32)
    mask = mask.astype(jnp.bfloat16)               # halve mask HBM bytes; 0/1 exact

    Np = _round_up(N, 128)                         # MXU / lane alignment
    Dp = _round_up(D, 128)                         # lane-dense output
    if Np != N:
        feat = jnp.pad(feat, ((0, 0), (0, Np - N), (0, 0)))
        mask = jnp.pad(mask, ((0, 0), (0, Np - N), (0, Np - N)))
    if Dp != D:
        feat = jnp.pad(feat, ((0, 0), (0, 0), (0, Dp - D)))

    tm = _pick_tile(Np, (256, 128))
    tn = _pick_tile(Dp, (256, 128))
    tk = _pick_tile(Np, (512, 256, 128))
    grid = (B, Np // tm, Dp // tn, Np // tk)       # reduction axis (k) last

    out = pl.pallas_call(
        _aggr_matmul_kernel,
        out_shape=jax.ShapeDtypeStruct((B, Np, Dp), jnp.float32),
        grid=grid,
        in_specs=[
            pl.BlockSpec((None, tm, tk), lambda b, i, j, k: (b, i, k)),
            pl.BlockSpec((None, tk, tn), lambda b, i, j, k: (b, k, j)),
        ],
        out_specs=pl.BlockSpec((None, tm, tn), lambda b, i, j, k: (b, i, j)),
        scratch_shapes=[pltpu.VMEM((tm, tn), jnp.float32)],
        compiler_params=pltpu.CompilerParams(
            dimension_semantics=("parallel", "parallel", "parallel", "arbitrary"),
        ),
    )(mask, feat)
    return out[:, :N, :D]


def _aggr_sum_4d(feat, mask):
    B, N, M, D = feat.shape
    assert mask.shape == (B, N, M)
    feat = feat.astype(jnp.float32)
    mask = mask.astype(jnp.bfloat16)

    Np = _round_up(N, 8)
    Mp = _round_up(M, 128)
    Dp = _round_up(D, 128)                         # lane-dense output
    if (Np, Mp, Dp) != (N, M, D):
        feat = jnp.pad(feat, ((0, 0), (0, Np - N), (0, Mp - M), (0, Dp - D)))
    if (Np, Mp) != (N, M):
        mask = jnp.pad(mask, ((0, 0), (0, Np - N), (0, Mp - M)))

    tk = _pick_tile(Mp, (256, 128))
    # Keep the streamed feat tile (tm, tk, Dp) under ~2 MiB so double-buffering
    # fits comfortably in default scoped VMEM on all of v5e / v6e / v7x.
    budget = 2 * 1024 * 1024
    tm = 8
    for cand in (128, 64, 32, 16, 8):
        if Np % cand == 0 and cand * tk * Dp * 4 <= budget:
            tm = cand
            break

    grid = (B, Np // tm, Mp // tk)                 # reduction axis (over M) last

    out = pl.pallas_call(
        _aggr_bcast_kernel,
        out_shape=jax.ShapeDtypeStruct((B, Np, Dp), jnp.float32),
        grid=grid,
        in_specs=[
            pl.BlockSpec((None, tm, tk), lambda b, i, k: (b, i, k)),
            pl.BlockSpec((None, tm, tk, Dp), lambda b, i, k: (b, i, k, 0)),
        ],
        out_specs=pl.BlockSpec((None, tm, Dp), lambda b, i, k: (b, i, 0)),
        scratch_shapes=[pltpu.VMEM((tm, Dp), jnp.float32)],
        compiler_params=pltpu.CompilerParams(
            dimension_semantics=("parallel", "parallel", "arbitrary"),
        ),
    )(mask, feat)
    return out[:, :N, :D]


def aggr_sum_pallas(feat, mask):
    """Pallas equivalent of GNN._aggr_sum(feat, mask)."""
    if feat.ndim == 4:
        return _aggr_sum_4d(feat, mask)
    elif feat.ndim == 3:
        return _aggr_sum_3d(feat, mask)
    else:
        raise ValueError(f"feat must be 3-D or 4-D, got {feat.ndim}-D")


class GNN:
    """JAX/Pallas mirror of the PyTorch GNN base module."""

    def __init__(self, dim_in, dim_hid, dropout=0, act="relu"):
        self.dropout = dropout
        self.dim_in = dim_in
        self.dim_hid = dim_hid
        if act == "relu":
            self.f_act = jax.nn.relu
        else:
            raise NotImplementedError

    def forward(self, feat_in, mask):
        # TODO(synk): reference forward raises NotImplementedError (abstract base class).
        raise NotImplementedError

    def _aggr_sum(self, feat, mask):
        return aggr_sum_pallas(feat, mask)


# ---------------------------------------------------------------------------
# Example run
# ---------------------------------------------------------------------------
if __name__ == "__main__":
    key = jax.random.PRNGKey(0)
    k1, k2, k3, k4 = jax.random.split(key, 4)

    B, N, M, D = 2, 8, 8, 32  # small shapes: batch, nodes, neighbors, hidden dim

    gnn = GNN(dim_in=D, dim_hid=D)

    # --- 3-D branch: feat [B, N, D], mask [B, N, N] (adjacency-style) ---
    feat3 = jax.random.normal(k1, (B, N, D), dtype=jnp.float32)
    mask3 = (jax.random.uniform(k2, (B, N, N)) > 0.5).astype(jnp.int32)
    out3 = gnn._aggr_sum(feat3, mask3)
    jax.block_until_ready(out3)
    ref3 = jnp.matmul(mask3.astype(jnp.float32), feat3)
    assert out3.shape == (B, N, D)
    assert jnp.allclose(out3, ref3, atol=1e-5, rtol=1e-5)

    # --- 4-D branch: feat [B, N, M, D], mask [B, N, M] ---
    feat4 = jax.random.normal(k3, (B, N, M, D), dtype=jnp.float32)
    mask4 = (jax.random.uniform(k4, (B, N, M)) > 0.5).astype(jnp.int32)
    out4 = gnn._aggr_sum(feat4, mask4)
    jax.block_until_ready(out4)
    ref4 = (mask4[..., None].astype(jnp.float32) * feat4).sum(axis=-2)
    assert out4.shape == (B, N, D)
    assert jnp.allclose(out4, ref4, atol=1e-5, rtol=1e-5)

    print("KERNEL_OK")
</pallas_src>

<mosaic_0001>
module attributes {stable_mosaic.version = 11 : i64} {
  func.func @_aggr_matmul_kernel(%arg0: i32, %arg1: i32, %arg2: i32, %arg3: i32, %arg4: memref<1x128x128xbf16, #tpu.memory_space<vmem>>, %arg5: memref<1x128x128xf32, #tpu.memory_space<vmem>>, %arg6: memref<1x128x128xf32, #tpu.memory_space<vmem>>, %arg7: memref<128x128xf32, #tpu.memory_space<vmem>>) attributes {dimension_semantics = [#tpu.dimension_semantics<parallel>, #tpu.dimension_semantics<parallel>, #tpu.dimension_semantics<parallel>, #tpu.dimension_semantics<arbitrary>], iteration_bounds = array<i64: 2, 1, 1, 1>, scalar_prefetch = 0 : i64, scratch_operands = 1 : i64, tpu.core_type = #tpu.core_type<tc>, window_params = [{transform_indices = @transform_0, window_bounds = array<i64: 1, 128, 128>}, {transform_indices = @transform_1, window_bounds = array<i64: 1, 128, 128>}, {transform_indices = @transform_2, window_bounds = array<i64: 1, 128, 128>}]} {
    %c0_i32 = arith.constant 0 : i32
    %0 = arith.cmpi eq, %arg3, %c0_i32 : i32
    %1 = arith.extui %0 : i1 to i32
    %c0_i32_0 = arith.constant 0 : i32
    %2 = arith.cmpi ne, %1, %c0_i32_0 : i32
    scf.if %2 {
      %cst_12 = arith.constant 0.000000e+00 : f32
      %15 = vector.broadcast %cst_12 : f32 to vector<128x128xf32>
      %c0_13 = arith.constant 0 : index
      %c0_14 = arith.constant 0 : index
      %16 = vector.load %arg7[%c0_13, %c0_14] : memref<128x128xf32, #tpu.memory_space<vmem>>, vector<128x128xf32>
      tpu.vector_store %arg7[%c0_13, %c0_14], %15 {strides = array<i32>} : memref<128x128xf32, #tpu.memory_space<vmem>>, vector<128x128xf32>,
    } else {
    }
    %c0 = arith.constant 0 : index
    %c0_1 = arith.constant 0 : index
    %c0_2 = arith.constant 0 : index
    %3 = vector.load %arg4[%c0, %c0_1, %c0_2] : memref<1x128x128xbf16, #tpu.memory_space<vmem>>, vector<1x128x128xbf16>
    %4 = vector.shape_cast %3 : vector<1x128x128xbf16> to vector<128x128xbf16>
    %5 = arith.extf %4 : vector<128x128xbf16> to vector<128x128xf32>
    %c0_3 = arith.constant 0 : index
    %c0_4 = arith.constant 0 : index
    %6 = vector.load %arg7[%c0_3, %c0_4] : memref<128x128xf32, #tpu.memory_space<vmem>>, vector<128x128xf32>
    %c0_5 = arith.constant 0 : index
    %c0_6 = arith.constant 0 : index
    %c0_7 = arith.constant 0 : index
    %7 = vector.load %arg5[%c0_5, %c0_6, %c0_7] : memref<1x128x128xf32, #tpu.memory_space<vmem>>, vector<1x128x128xf32>
    %8 = vector.shape_cast %7 : vector<1x128x128xf32> to vector<128x128xf32>
    %cst = arith.constant dense<0.000000e+00> : vector<128x128xf32>
    %9 = tpu.matmul %5, %8, %cst {dimension_numbers = #tpu.dot_dimension_numbers<[1], [0], [0], [1], [0, 0, 1, 1], [], []>} : vector<128x128xf32>, vector<128x128xf32>, vector<128x128xf32> -> vector<128x128xf32>
    %10 = arith.addf %6, %9 : vector<128x128xf32>
    %c0_8 = arith.constant 0 : index
    %c0_9 = arith.constant 0 : index
    %11 = vector.load %arg7[%c0_8, %c0_9] : memref<128x128xf32, #tpu.memory_space<vmem>>, vector<128x128xf32>
    tpu.vector_store %arg7[%c0_8, %c0_9], %10 {strides = array<i32>} : memref<128x128xf32, #tpu.memory_space<vmem>>, vector<128x128xf32>,
    %c0_i32_10 = arith.constant 0 : i32
    %12 = arith.cmpi eq, %arg3, %c0_i32_10 : i32
    %13 = arith.extui %12 : i1 to i32
    %c0_i32_11 = arith.constant 0 : i32
    %14 = arith.cmpi ne, %13, %c0_i32_11 : i32
    scf.if %14 {
      %c0_12 = arith.constant 0 : index
      %c0_13 = arith.constant 0 : index
      %15 = vector.load %arg7[%c0_12, %c0_13] : memref<128x128xf32, #tpu.memory_space<vmem>>, vector<128x128xf32>
      %c0_14 = arith.constant 0 : index
      %c0_15 = arith.constant 0 : index
      %c0_16 = arith.constant 0 : index
      %16 = vector.load %arg6[%c0_14, %c0_15, %c0_16] : memref<1x128x128xf32, #tpu.memory_space<vmem>>, vector<1x128x128xf32>
      %17 = vector.shape_cast %16 : vector<1x128x128xf32> to vector<128x128xf32>
      %18 = vector.shape_cast %15 : vector<128x128xf32> to vector<1x128x128xf32>
      tpu.vector_store %arg6[%c0_14, %c0_15, %c0_16], %18 {strides = array<i32>} : memref<1x128x128xf32, #tpu.memory_space<vmem>>, vector<1x128x128xf32>,
    } else {
    }
    return
  }
  func.func @transform_0(%arg0: i32, %arg1: i32, %arg2: i32, %arg3: i32) -> (i32, i32, i32) {
    %c0_i32 = arith.constant 0 : i32
    return %arg0, %arg1, %arg3 : i32, i32, i32
  }
  func.func @transform_1(%arg0: i32, %arg1: i32, %arg2: i32, %arg3: i32) -> (i32, i32, i32) {
    %c0_i32 = arith.constant 0 : i32
    return %arg0, %arg3, %arg2 : i32, i32, i32
  }
  func.func @transform_2(%arg0: i32, %arg1: i32, %arg2: i32, %arg3: i32) -> (i32, i32, i32) {
    %c0_i32 = arith.constant 0 : i32
    return %arg0, %arg1, %arg2 : i32, i32, i32
  }
}

</mosaic_0001>

<bundles_post_ra>
// kernel: tpu_custom_call.1
= control target key start
LH: loop header
LB: loop body
LE: loop exit
PB: predicated region body
PF: predicated region fallthrough
CT: control target
= control target key end

     0   :  { %7 = vsyncpa [#allocation4], 0  ;;  %s1331_s0 = inlined_call_operand.hbm [shape: bf16[2,128,128], index: 0, kind: input, shape index: {}]   ;;  %s1332_s1 = inlined_call_operand.hbm [shape: f32[2,128,128], index: 1, kind: input, shape index: {}]   ;;  %s1333_s2 = inlined_call_operand.hbm [shape: f32[2,128,128], index: 2, kind: output, shape index: {}]  }
   0x1   :  { %9 = vsyncpa [#allocation4 + $0x1], 0 }
   0x2   :  { %10 = vsyncpa [#allocation7], 0 }
   0x3   :  { %12 = vsyncpa [#allocation7 + $0x1], 0 }
   0x4   :  { %13 = vsyncpa [#allocation5], 0 }
   0x5   :  { %15 = vsyncpa [#allocation5 + $0x1], 0  ;;  %s1104_s9 = smov 0   ;;  %s1106_s10 = smov 0  }
   0x6   :  { %s1108_s11 = smov 0   ;;  %s1110_s12 = smov 0  }
   0x7   :  { %s1112_s13 = smov 0   ;;  %s1114_s14 = smov 0  }
   0x8 LB: > { %s684_s15 = sadd.s32 4294967295, %s1078_s14   ;;  %s685_s16 = sadd.s32 4294967294, %s1078_s14   ;;  %s1078_s14 = sphi %s1114_s14, %s21_s14   ;;  %s1074_s13 = sphi %s1112_s13, %s1344_s13   ;;  %s1070_s12 = sphi %s1110_s12, %s1343_s12   ;;  %s1066_s11 = sphi %s1108_s11, %s1342_s11   ;;  %s1062_s10 = sphi %s1106_s10, %s1341_s10   ;;  %s1058_s9 = sphi %s1104_s9, %s1340_s9  }
   0x9   : > { %s47_s17 = sadd.s32 1, %s1074_s13  ;;  %s58_s18 = sadd.s32 1, %s1066_s11 }
   0xa   : > { %p49_p0 = scmp.ge.s32.totalorder %s47_s17, 2  ;;  %p65_p1 = scmp.ne.s32.totalorder %s1066_s11, %s1062_s10 }
   0xb   : > { %p66_p2 = scmp.eq.s32.totalorder %s1078_s14, 0  ;;  %p71_p3 = scmp.ne.s32.totalorder %s1062_s10, %s1058_s9 }
   0xc   : > { %s1346_s17 = smov (%p49_p0, %s47_s17), 0  ;;  %p72_p5 = scmp.eq.s32.totalorder %s684_s15, 0 }
   0xd   : > { %p1145_p4 = por %p66_p2, %p65_p1  ;;  %s51_s20 = ssub.s32 %s1074_s13, %s1346_s17 }
   0xe   : > { %p129_p6 = scmp.eq.s32.totalorder %s684_s15, 1  ;;  %p56_p7 = scmp.eq.s32.totalorder %s51_s20, 0 }
   0xf   : > { %p1151_p8 = por %p72_p5, %p71_p3  ;;  %p135_p10 = scmp.eq.s32.totalorder %s685_s16, 1 }
  0x10   : > { %p1155_p9 = por %p129_p6, %p65_p1  ;;  %p687_p12 = scmp.ge.s32.totalorder %s1078_s14, 2 }
  0x11   : > { %s1160_s23 = scalar_select %p56_p7, %s1066_s11, %s58_s18  }
  0x12   : > { %p1162_p11 = por %p135_p10, %p71_p3  ;;  %p882_p13 = scmp.lt.s32.totalorder %s1078_s14, 2 }
  0x13   : > { %s1169_s25 = sand.u32 1, %s1066_s11   ;;  %s703_s27 = sshll.u32 %s1074_s13, 10 }
  0x14   : > { %s688_s26 = sshll.u32 %s1169_s25, 6  ;;  %s168_s30 = scalar_lea.hbm %s1331_s0, %s703_s27 }
  0x15   : > { %s159_s3 = scalar_lea.vmem [#allocation3], %s688_s26  ;;  %p1178_p0 = pnand %p882_p13, %p1145_p4 }
  0x16   : > { %s169_s4 = sshll.u32 %s159_s3, 4  ;;  %p694_p1 = scmp.ge.s32.totalorder %s1078_s14, 1  ;;  %s170_s4 = int_to_ptr.vmem [resolvable:$true] %s169_s4 }
  0x17   : > { %s156_s6 = scalar_lea.sflag [#allocation4], %s1169_s25  ;;  %p940_p2 = pneg %p1178_p0 }
  0x18   : > { %s951_s7 = scalar_lea.vmem %s170_s4, 1024  ;;  %s1080_s8 = smov [#allocation3]  }
  0x19   : > { %p952_p3 = scmp.ne.s32.totalorder %s170_s4, %s951_s7  ;;  %s956_s15 = sshll.u32 %s1080_s8, 4  ;;  %s957_s15 = int_to_ptr.vmem [resolvable:$false] %s956_s15 }
  0x1a   : > { %s958_s16 = scalar_lea.vmem %s957_s15, 2048  ;;  %p959_p4 = scmp.lt.s32.totalorder %s170_s4, %s957_s15 }
  0x1b   : > { %p954_p5 = pnand %p952_p3, %p940_p2  ;;  %p960_p7 = scmp.lt.s32.totalorder %s958_s16, %s951_s7 }
  0x1d   : > { %p955_p6 = pneg %p954_p5  ;;  %p961_p10 = por %p960_p7, %p959_p4 }
  0x1f   : > { %p962_p13 = pnand %p961_p10, %p955_p6 }
  0x21   : > { %965 = shalt.err (!%p962_p13)
}
  0x22   : > { %s1081_s18 = smov 64   ;;  %s1082_s19 = smov 4  }
  0x23   : > { %874 = dma.hbm_to_vmem [thread:$0]  (!%p1178_p0), %s168_s30, 1024, %s170_s4, %s156_s6, %s1081_s18, %s1081_s18, %s1082_s19  }
  0x24   : > { %p201_p3 = scmp.lt.s32.totalorder %s1078_s14, 3  ;;  %s691_s20 = sshll.u32 %s1169_s25, 7 }
  0x25   : > { %s704_s26 = sshll.u32 %s1074_s13, 11  ;;  %s183_s7 = scalar_lea.vmem [#allocation6], %s691_s20 }
  0x26   : > { %p1196_p5 = pnand %p694_p1, %p201_p3  ;;  %s192_s3 = scalar_lea.hbm %s1332_s1, %s704_s26 }
  0x27   : > { %s193_s8 = sshll.u32 %s183_s7, 4  ;;  %s180_s15 = scalar_lea.sflag [#allocation7], %s1169_s25  ;;  %s194_s8 = int_to_ptr.vmem [resolvable:$true] %s193_s8 }
  0x28   : > { %s979_s16 = scalar_lea.vmem %s194_s8, 2048  ;;  %s1083_s30 = smov [#allocation6]  }
  0x29   : > { %p980_p6 = scmp.ne.s32.totalorder %s194_s8, %s979_s16  ;;  %s984_s4 = sshll.u32 %s1083_s30, 4  ;;  %s985_s4 = int_to_ptr.vmem [resolvable:$false] %s984_s4 }
  0x2a   : > { %s986_s6 = scalar_lea.vmem %s985_s4, 4096  ;;  %p987_p1 = scmp.lt.s32.totalorder %s194_s8, %s985_s4 }
  0x2b   : > { %p982_p4 = pnand %p980_p6, %p940_p2  ;;  %p988_p10 = scmp.lt.s32.totalorder %s986_s6, %s979_s16 }
  0x2d   : > { %p983_p7 = pneg %p982_p4  ;;  %p989_p13 = por %p988_p10, %p987_p1 }
  0x2f   : > { %p990_p3 = pnand %p989_p13, %p983_p7 }
  0x31   : > { %993 = shalt.err (!%p990_p3)
}
  0x32   : > { %s1084_s18 = smov 128   ;;  %s1085_s19 = smov 8  }
  0x33   : > { %877 = dma.hbm_to_vmem [thread:$0]  (!%p1178_p0), %s192_s3, 2048, %s194_s8, %s180_s15, %s1084_s18, %s1084_s18, %s1085_s19  }
  0x34   : > { %205 = sbr.rel (%p1196_p5) target bundleno = 316 (0x13c), region = 28  ;;  %s1212_s25 = sand.u32 (!%p1196_p5), 1, %s1062_s10  }
  0x35   : > { %s695_s20 = sshll.u32 (!%p1196_p5), %s1212_s25, 6  ;;  %s208_s26 = scalar_lea.sflag (!%p1196_p5), [#allocation4], %s1212_s25 }
  0x36   : > { %s1216_s28 = scalar_lea.vmem (!%p1196_p5), [#allocation3], %s695_s20 }
  0x39   : > { %1045 = dma.done.wait (%p1151_p8), %s208_s26, 1024  }
  0x3a   : > { %1047 = vsyncadd (%p1151_p8), %s208_s26, 4294966272  ;;  %s696_s5 = sshll.u32 %s1212_s25, 7  ;;  %s217_s27 = scalar_lea.sflag [#allocation7], %s1212_s25 }
  0x3b   : > { %s1226_s29 = scalar_lea.vmem [#allocation6], %s696_s5 }
  0x3c   : > { %1049 = dma.done.wait (%p1151_p8), %s217_s27, 2048  }
  0x3d   : > { %1051 = vsyncadd (%p1151_p8), %s217_s27, 4294965248  ;;  %v332_v0 = vld [vmem:[%s1226_s29 + $0x78] sm:$0xff]  ;;  %v331_v1 = vld [vmem:[%s1226_s29 + $0x70] sm:$0xff]  ;;  %s1258_s21 = scalar_lea.vmem [#allocation8], %s696_s5  ;;  %s705_s3 = sshll.u32 %s1070_s12, 11 }
  0x3e   : > { %777 = vmatprep.subr.mxu0 %v332_v0  ;;  %833 = vmatprep.subr.mxu1 %v332_v0  ;;  %v330_v2 = vld [vmem:[%s1226_s29 + $0x68] sm:$0xff]  ;;  %v329_v3 = vld [vmem:[%s1226_s29 + $0x60] sm:$0xff]  ;;  %v328_v4 = vld [vmem:[%s1226_s29 + $0x58] sm:$0xff]  ;;  %s562_s7 = sshll.u32 %s1258_s21, 4  ;;  %s1277_s16 = scalar_lea.hbm %s1333_s2, %s705_s3  ;;  %s1279_s7 = int_to_ptr.vmem [resolvable:$true] %s562_s7 }
  0x3f   : > { %778 = vmatpush3.msra.mxu0 %v332_v0  ;;  %849 = vmatpush3.msra.mxu1 %v332_v0  ;;  %v327_v5 = vld [vmem:[%s1226_s29 + $0x50] sm:$0xff]  ;;  %v326_v6 = vld [vmem:[%s1226_s29 + $0x48] sm:$0xff]  ;;  %v325_v7 = vld [vmem:[%s1226_s29 + $0x40] sm:$0xff]  ;;  %s546_s12 = scalar_lea.sflag [#allocation5], %s1212_s25  ;;  %s994_s30 = scalar_lea.vmem %s1279_s7, 2048 }
  0x40   : > { %779 = vmatprep.subr.mxu0 %v331_v1  ;;  %834 = vmatprep.subr.mxu1 %v331_v1  ;;  %v324_v8 = vld [vmem:[%s1226_s29 + $0x38] sm:$0xff]  ;;  %v323_v9 = vld [vmem:[%s1226_s29 + $0x30] sm:$0xff]  ;;  %v322_v10 = vld [vmem:[%s1226_s29 + $0x28] sm:$0xff]  ;;  %p995_p8 = scmp.ne.s32.totalorder %s1279_s7, %s994_s30  ;;  %s1086_s4 = smov [#allocation8]  }
  0x41   : > { %780 = vmatpush3.msra.mxu0 %v331_v1  ;;  %850 = vmatpush3.msra.mxu1 %v331_v1  ;;  %v321_v11 = vld [vmem:[%s1226_s29 + $0x20] sm:$0xff]  ;;  %v320_v12 = vld [vmem:[%s1226_s29 + $0x18] sm:$0xff]  ;;  %v319_v13 = vld [vmem:[%s1226_s29 + $0x10] sm:$0xff]  ;;  %s998_s6 = sshll.u32 %s1086_s4, 4  ;;  %s999_s6 = int_to_ptr.vmem [resolvable:$false] %s998_s6 }
  0x42   : > { %781 = vmatprep.subr.mxu0 %v330_v2  ;;  %835 = vmatprep.subr.mxu1 %v330_v2  ;;  %v318_v14 = vld [vmem:[%s1226_s29 + $0x8] sm:$0xff]  ;;  %v707_v15 = vld [vmem:[%s1216_s28] sm:$0xff]   ;;  %v739_v26 = vld [vmem:[%s1216_s28 + $0x10] sm:$0xff]   ;;  %p996_p0 = pnand %p995_p8, %p1155_p9  ;;  %s1000_s18 = scalar_lea.vmem %s999_s6, 4096 }
  0x43   : > { %782 = vmatpush3.msra.mxu0 %v330_v2  ;;  %851 = vmatpush3.msra.mxu1 %v330_v2  ;;  %v741_v16 = vld [vmem:[%s1216_s28 + $0x20] sm:$0xff]   ;;  %v738_v18 = vld [vmem:[%s1216_s28 + $0x8] sm:$0xff]   ;;  %v708_v20 = vunpack.c.l.bf16 %v707_v15  ;;  %v709_v22 = vunpack.c.h.bf16 %v707_v15  ;;  %v743_v27 = vld [vmem:[%s1216_s28 + $0x30] sm:$0xff]   ;;  %v716_v30 = vunpack.c.l.bf16 %v739_v26  ;;  %v717_v34 = vunpack.c.h.bf16 %v739_v26  ;;  %p1001_p5 = scmp.lt.s32.totalorder %s1279_s7, %s999_s6  ;;  %p1002_p6 = scmp.lt.s32.totalorder %s1000_s18, %s994_s30 }
  0x44   : > { %783 = vmatprep.subr.mxu0 %v329_v3  ;;  %836 = vmatprep.subr.mxu1 %v329_v3  ;;  %v317_v17 = vld [vmem:[%s1226_s29] sm:$0xff]  ;;  %v742_v19 = vld [vmem:[%s1216_s28 + $0x28] sm:$0xff]   ;;  %v724_v21 = vunpack.c.l.bf16 %v741_v16  ;;  %v725_v23 = vunpack.c.h.bf16 %v741_v16  ;;  %v712_v24 = vunpack.c.l.bf16 %v738_v18  ;;  %v713_v28 = vunpack.c.h.bf16 %v738_v18  ;;  %v740_v32 = vld [vmem:[%s1216_s28 + $0x18] sm:$0xff]   ;;  %p997_p2 = pneg %p996_p0 }
  0x45   : > { %784 = vmatpush3.msra.mxu0 %v329_v3  ;;  %852 = vmatpush3.msra.mxu1 %v329_v3  ;;  %v728_v25 = vunpack.c.l.bf16 %v742_v19  ;;  %v729_v29 = vunpack.c.h.bf16 %v742_v19  ;;  %v732_v31 = vunpack.c.l.bf16 %v743_v27  ;;  %v744_v33 = vld [vmem:[%s1216_s28 + $0x38] sm:$0xff]   ;;  %v733_v35 = vunpack.c.h.bf16 %v743_v27  ;;  %p1003_p4 = por %p1002_p6, %p1001_p5 }
  0x46   : > { %785 = vmatprep.subr.mxu0 %v328_v4  ;;  %837 = vmatprep.subr.mxu1 %v328_v4  ;;  %v720_v36 = vunpack.c.l.bf16 %v740_v32  ;;  %v736_v37 = vunpack.c.l.bf16 %v744_v33  ;;  %v721_v38 = vunpack.c.h.bf16 %v740_v32  ;;  %v737_v39 = vunpack.c.h.bf16 %v744_v33 }
  0x47   : > { %786 = vmatpush3.msra.mxu0 %v328_v4  ;;  %853 = vmatpush3.msra.mxu1 %v328_v4  ;;  %p1004_p7 = pnand %p1003_p4, %p997_p2 }
  0x48   : > { %787 = vmatprep.subr.mxu0 %v327_v5  ;;  %838 = vmatprep.subr.mxu1 %v327_v5 }
  0x49   : > { %788 = vmatpush3.msra.mxu0 %v327_v5  ;;  %854 = vmatpush3.msra.mxu1 %v327_v5 }
  0x4a   : > { %789 = vmatprep.subr.mxu0 %v326_v6  ;;  %839 = vmatprep.subr.mxu1 %v326_v6 }
  0x4b   : > { %790 = vmatpush3.msra.mxu0 %v326_v6  ;;  %855 = vmatpush3.msra.mxu1 %v326_v6 }
  0x4c   : > { %791 = vmatprep.subr.mxu0 %v325_v7  ;;  %840 = vmatprep.subr.mxu1 %v325_v7 }
  0x4d   : > { %792 = vmatpush3.msra.mxu0 %v325_v7  ;;  %856 = vmatpush3.msra.mxu1 %v325_v7 }
  0x4e   : > { %793 = vmatprep.subr.mxu0 %v324_v8  ;;  %841 = vmatprep.subr.mxu1 %v324_v8 }
  0x4f   : > { %794 = vmatpush3.msra.mxu0 %v324_v8  ;;  %857 = vmatpush3.msra.mxu1 %v324_v8 }
  0x50   : > { %795 = vmatprep.subr.mxu0 %v323_v9  ;;  %842 = vmatprep.subr.mxu1 %v323_v9 }
  0x51   : > { %796 = vmatpush3.msra.mxu0 %v323_v9  ;;  %858 = vmatpush3.msra.mxu1 %v323_v9 }
  0x52   : > { %797 = vmatprep.subr.mxu0 %v322_v10  ;;  %843 = vmatprep.subr.mxu1 %v322_v10 }
  0x53   : > { %798 = vmatpush3.msra.mxu0 %v322_v10  ;;  %859 = vmatpush3.msra.mxu1 %v322_v10 }
  0x54   : > { %799 = vmatprep.subr.mxu0 %v321_v11  ;;  %844 = vmatprep.subr.mxu1 %v321_v11 }
  0x55   : > { %800 = vmatpush3.msra.mxu0 %v321_v11  ;;  %860 = vmatpush3.msra.mxu1 %v321_v11 }
  0x56   : > { %801 = vmatprep.subr.mxu0 %v320_v12  ;;  %845 = vmatprep.subr.mxu1 %v320_v12 }
  0x57   : > { %802 = vmatpush3.msra.mxu0 %v320_v12  ;;  %861 = vmatpush3.msra.mxu1 %v320_v12 }
  0x58   : > { %803 = vmatprep.subr.mxu0 %v319_v13  ;;  %846 = vmatprep.subr.mxu1 %v319_v13 }
  0x59   : > { %804 = vmatpush3.msra.mxu0 %v319_v13  ;;  %862 = vmatpush3.msra.mxu1 %v319_v13 }
  0x5a   : > { %805 = vmatprep.subr.mxu0 %v318_v14  ;;  %847 = vmatprep.subr.mxu1 %v318_v14 }
  0x5b   : > { %806 = vmatpush3.msra.mxu0 %v318_v14  ;;  %863 = vmatpush3.msra.mxu1 %v318_v14 }
  0x5c   : > { %807 = vmatprep.subr.mxu0 %v317_v17  ;;  %848 = vmatprep.subr.mxu1 %v317_v17 }
  0x5d   : > { %808 = vmatpush3.msra.mxu0 %v317_v17  ;;  %864 = vmatpush3.msra.mxu1 %v317_v17 }
  0x5e   : > { %809 = vmatprep.mubr.f32.mxu0 %v708_v20  ;;  %821 = vmatprep.mubr.f32.mxu1 %v724_v21 }
  0x5f   : > { %810 = vmatmul.mubr.f32.vlgmr.msra.gmra.mxu0 %v709_v22  ;;  %822 = vmatmul.mubr.f32.vlgmr.msra.gmra.mxu1 %v725_v23 }
  0x60   : > { %812 = vmatprep.mubr.f32.mxu0 %v712_v24  ;;  %824 = vmatprep.mubr.f32.mxu1 %v728_v25 }
  0x63   : > { %813 = vmatmul.mubr.f32.gmra.mxu0 %v713_v28  ;;  %825 = vmatmul.mubr.f32.gmra.mxu1 %v729_v29 }
  0x64   : > { %815 = vmatprep.mubr.f32.mxu0 %v716_v30  ;;  %827 = vmatprep.mubr.f32.mxu1 %v732_v31 }
  0x67   : > { %816 = vmatmul.mubr.f32.gmra.mxu0 %v717_v34  ;;  %828 = vmatmul.mubr.f32.gmra.mxu1 %v733_v35 }
  0x68   : > { %818 = vmatprep.mubr.f32.mxu0 %v720_v36  ;;  %830 = vmatprep.mubr.f32.mxu1 %v736_v37 }
  0x6b   : > { %819 = vmatmul.mubr.f32.gmra.mxu0 %v721_v38  ;;  %831 = vmatmul.mubr.f32.gmra.mxu1 %v737_v39 }
 0x11f   : > { %v811_v40 = vpop.f32.mrf.mxu0  ;;  %v823_v41 = vpop.f32.mrf.mxu1 }
 0x120   : > { %530 = vst [vmem:[%s1258_s21 + $0x8] sm:$0xff] %v811_v40  ;;  %538 = vst [vmem:[%s1258_s21 + $0x48] sm:$0xff] %v823_v41 }
 0x121   : > { %v399_v42 = vpop.f32.mrf.mxu0  ;;  %v439_v43 = vpop.f32.mrf.mxu1 }
 0x122   : > { %529 = vst [vmem:[%s1258_s21] sm:$0xff] %v399_v42  ;;  %537 = vst [vmem:[%s1258_s21 + $0x40] sm:$0xff] %v439_v43 }
 0x123   : > { %v814_v44 = vpop.f32.mrf.mxu0  ;;  %v826_v45 = vpop.f32.mrf.mxu1 }
 0x124   : > { %532 = vst [vmem:[%s1258_s21 + $0x18] sm:$0xff] %v814_v44  ;;  %540 = vst [vmem:[%s1258_s21 + $0x58] sm:$0xff] %v826_v45 }
 0x125   : > { %v409_v46 = vpop.f32.mrf.mxu0  ;;  %v449_v47 = vpop.f32.mrf.mxu1 }
 0x126   : > { %531 = vst [vmem:[%s1258_s21 + $0x10] sm:$0xff] %v409_v46  ;;  %539 = vst [vmem:[%s1258_s21 + $0x50] sm:$0xff] %v449_v47 }
 0x127   : > { %v817_v48 = vpop.f32.mrf.mxu0  ;;  %v829_v49 = vpop.f32.mrf.mxu1 }
 0x128   : > { %534 = vst [vmem:[%s1258_s21 + $0x28] sm:$0xff] %v817_v48  ;;  %542 = vst [vmem:[%s1258_s21 + $0x68] sm:$0xff] %v829_v49 }
 0x129   : > { %v419_v50 = vpop.f32.mrf.mxu0  ;;  %v459_v51 = vpop.f32.mrf.mxu1 }
 0x12a   : > { %533 = vst [vmem:[%s1258_s21 + $0x20] sm:$0xff] %v419_v50  ;;  %541 = vst [vmem:[%s1258_s21 + $0x60] sm:$0xff] %v459_v51 }
 0x12b   : > { %v820_v52 = vpop.f32.mrf.mxu0  ;;  %v832_v53 = vpop.f32.mrf.mxu1 }
 0x12c   : > { %536 = vst [vmem:[%s1258_s21 + $0x38] sm:$0xff] %v820_v52  ;;  %544 = vst [vmem:[%s1258_s21 + $0x78] sm:$0xff] %v832_v53 }
 0x12d   : > { %v429_v54 = vpop.f32.mrf.mxu0  ;;  %v469_v55 = vpop.f32.mrf.mxu1 }
 0x12e   : > { %535 = vst [vmem:[%s1258_s21 + $0x30] sm:$0xff] %v429_v54  ;;  %543 = vst [vmem:[%s1258_s21 + $0x70] sm:$0xff] %v469_v55 }
 0x12f   : > { %1007 = shalt.err (!%p1004_p7)
}
 0x130   : > { %s1008_s19 = scalar_lea.hbm %s1277_s16, 2048  ;;  %s1012_s28 = scalar_lea.hbm %s1333_s2, 4096 }
 0x131   : > { %p1009_p1 = scmp.ne.s32.totalorder %s1277_s16, %s1008_s19  ;;  %p1013_p3 = scmp.lt.s32.totalorder %s1277_s16, %s1333_s2 }
 0x132   : > { %p1014_p8 = scmp.lt.s32.totalorder %s1012_s28, %s1008_s19 }
 0x133   : > { %p1010_p10 = pnand %p1009_p1, %p1155_p9 }
 0x134   : > { %p1015_p0 = por %p1014_p8, %p1013_p3 }
 0x135   : > { %p1011_p13 = pneg %p1010_p10 }
 0x137   : > { %p1016_p2 = pnand %p1015_p0, %p1011_p13 }
 0x139   : > { %1019 = shalt.err (!%p1016_p2)
}
 0x13a   : > { %s1087_s29 = smov 128   ;;  %s1088_s21 = smov 8  }
 0x13b   : > { %869 = dma.vmem_to_hbm [thread:$0]  (%p1155_p9), %s1279_s7, 2048, %s1277_s16, %s546_s12, %s1087_s29, %s1087_s29, %s1088_s21  }
 0x13c PF: > { %s577_s3 = sand.u32 1, %s1058_s9   ;;  %p879_p5 = pnand %p687_p12, %p1162_p11 }
 0x13d   : > { %s578_s8 = scalar_lea.sflag [#allocation5], %s577_s3 }
 0x13e   : > { %p880_p6 = pneg %p879_p5 }
 0x140   : > { %1053 = dma.done.wait (%p880_p6), %s578_s8, 2048  }
 0x141   : > { %1055 = vsyncadd (%p880_p6), %s578_s8, 4294965248  ;;  %s21_s14 = sadd.s32 1, %s1078_s14   ;;  %s1340_s9 = smov %s1062_s10 }
 0x142   : > { %p18_p4 = scmp.ge.s32.totalorder %s21_s14, 4   ;;  %s1341_s10 = smov %s1066_s11 }
 0x143   : > { %s1342_s11 = smov %s1160_s23  ;;  %s1343_s12 = smov %s1074_s13 }
 0x144   : > { %s1344_s13 = smov %s1346_s17  ;;  %20 = sbr.rel (!%p18_p4) target bundleno = 8 (0x8), region = 94 }
 0x149   :  { %583 = vsyncpa [#allocation4], 1 }
 0x14a   :  { %585 = vsyncpa [#allocation4 + $0x1], 1 }
 0x14b   :  { %586 = vsyncpa [#allocation7], 1 }
 0x14c   :  { %588 = vsyncpa [#allocation7 + $0x1], 1 }
 0x14d   :  { %589 = vsyncpa [#allocation5], 1 }
 0x14e   :  { %591 = vsyncpa [#allocation5 + $0x1], 1 }

</bundles_post_ra>
